<compile_context>
chip_gen: v6e
topology: v6e:2x2x1
jax: 0.10.0
libtpu: 0.0.40
codegen_flags: <defaults>
</compile_context>

<pallas_src>
import functools

import jax
import jax.numpy as jnp
from jax.experimental import pallas as pl
from jax.experimental.pallas import tpu as pltpu

_LANE = 128     # lane width (last dim)
_SUBLANE = 8    # sublane width (second-to-last dim)


def _round_up(x, m):
    return ((x + m - 1) // m) * m


def _fused_decoder_kernel(x_ref, w_ref, b_ref, o_ref):
    # x_ref: (TB, P)   activation tile (batch rows x padded features)
    # w_ref: (L, P, P) all layer weights, zero-padded, resident in VMEM
    # b_ref: (L, 1, P) all layer biases, zero-padded
    # o_ref: (TB, P)   output tile
    act = x_ref[...].astype(jnp.float32)
    num_layers = w_ref.shape[0]
    for layer in range(num_layers):          # static, unrolled (L known at trace time)
        y = jnp.dot(act, w_ref[layer], preferred_element_type=jnp.float32)
        y = y + b_ref[layer]                 # (1, P) broadcast over batch rows (VPU)
        act = jnp.maximum(y, 0.0)            # ReLU on the f32 accumulator
    o_ref[...] = act.astype(o_ref.dtype)


def init_nn_decoder_params(key, hidden_dim, output_dim, layer_num):
    """Deterministic parameter init mirroring NNDecoder.__init__ shapes.

    Layers 0..layer_num-2: Linear(hidden_dim, hidden_dim)
    Layer  layer_num-1   : Linear(hidden_dim, output_dim)
    Weights stored as (in, out); biases as (out,).  y = x @ W + b.
    """
    params = []
    dims = [(hidden_dim, hidden_dim)] * (layer_num - 1) + [(hidden_dim, output_dim)]
    for (din, dout) in dims:
        key, kw, kb = jax.random.split(key, 3)
        bound = 1.0 / jnp.sqrt(din)  # same scale as PyTorch's default Linear init
        w = jax.random.uniform(kw, (din, dout), jnp.float32, -bound, bound)
        b = jax.random.uniform(kb, (dout,), jnp.float32, -bound, bound)
        params.append((w, b))
    return params


def pack_nn_decoder_params(params):
    """Stack per-layer (w:(din,dout), b:(dout,)) into lane-padded (L,P,P)/(L,1,P).

    Zero padding is exact for the forward pass: padded input columns are zero,
    padded weight rows/cols are zero, padded bias entries are zero, so padded
    output columns are ReLU(0) = 0 and never contaminate later layers.
    """
    max_dim = max(max(w.shape) for w, _ in params)
    P = _round_up(max_dim, _LANE)
    L = len(params)
    w_stack = jnp.zeros((L, P, P), jnp.float32)
    b_stack = jnp.zeros((L, 1, P), jnp.float32)
    for layer, (w, b) in enumerate(params):
        din, dout = w.shape
        w_stack = w_stack.at[layer, :din, :dout].set(w.astype(jnp.float32))
        b_stack = b_stack.at[layer, 0, :dout].set(b.astype(jnp.float32))
    return w_stack, b_stack


@functools.partial(jax.jit, static_argnames=("output_dim", "block_batch"))
def nn_decoder_forward(x, w_stack, b_stack, output_dim, block_batch=512):
    """Fused forward: one pallas_call for the whole Linear+ReLU stack."""
    B, H = x.shape
    L, P, _ = w_stack.shape

    # Batch tile: multiple of 8 sublanes, capped at block_batch rows.
    TB = min(block_batch, _round_up(B, _SUBLANE))
    Bp = _round_up(B, TB)

    # Zero-pad input to (Bp, P): lane-dense, sublane-aligned.
    x_pad = jnp.zeros((Bp, P), x.dtype).at[:B, :H].set(x)

    out = pl.pallas_call(
        _fused_decoder_kernel,
        out_shape=jax.ShapeDtypeStruct((Bp, P), x.dtype),
        grid_spec=pltpu.PrefetchScalarGridSpec(
            num_scalar_prefetch=0,
            grid=(Bp // TB,),
            in_specs=[
                pl.BlockSpec((TB, P), lambda i: (i, 0)),        # activation tile
                pl.BlockSpec((L, P, P), lambda i: (0, 0, 0)),   # all weights (constant block -> DMA'd once)
                pl.BlockSpec((L, 1, P), lambda i: (0, 0, 0)),   # all biases
            ],
            out_specs=pl.BlockSpec((TB, P), lambda i: (i, 0)),
        ),
        compiler_params=pltpu.CompilerParams(
            # Batch axis is embarrassingly parallel -> 2-TC sharding on v7x.
            dimension_semantics=("parallel",),
        ),
    )(x_pad, w_stack, b_stack)

    return out[:B, :output_dim]


def _reference_forward(x, params):
    for (w, b) in params:
        x = jnp.maximum(x @ w + b, 0.0)
    return x


if __name__ == "__main__":
    hidden_dim = 32
    output_dim = 16
    layer_num = 3
    batch = 8

    key = jax.random.PRNGKey(0)
    key, kx = jax.random.split(key)
    x = jax.random.normal(kx, (batch, hidden_dim), jnp.float32)

    params = init_nn_decoder_params(key, hidden_dim, output_dim, layer_num)
    w_stack, b_stack = pack_nn_decoder_params(params)

    out = nn_decoder_forward(x, w_stack, b_stack, output_dim)
    out = jax.block_until_ready(out)

    ref = _reference_forward(x, params)
    assert out.shape == (batch, output_dim), out.shape
    assert jnp.allclose(out, ref, atol=1e-5, rtol=1e-5), "mismatch vs reference"

    print("KERNEL_OK")
</pallas_src>

<mosaic_0001>
module attributes {stable_mosaic.version = 11 : i64} {
  func.func @_fused_decoder_kernel(%arg0: i32, %arg1: memref<8x128xf32, #tpu.memory_space<vmem>>, %arg2: memref<3x128x128xf32, #tpu.memory_space<vmem>>, %arg3: memref<3x1x128xf32, #tpu.memory_space<vmem>>, %arg4: memref<8x128xf32, #tpu.memory_space<vmem>>) attributes {dimension_semantics = [#tpu.dimension_semantics<parallel>], iteration_bounds = array<i64: 1>, scalar_prefetch = 0 : i64, scratch_operands = 0 : i64, tpu.core_type = #tpu.core_type<tc>, window_params = [{transform_indices = @transform_0, window_bounds = array<i64: 8, 128>}, {pipeline_mode = #tpu.pipeline_mode<synchronous>, transform_indices = @transform_1, window_bounds = array<i64: 3, 128, 128>}, {pipeline_mode = #tpu.pipeline_mode<synchronous>, transform_indices = @transform_2, window_bounds = array<i64: 3, 1, 128>}, {transform_indices = @transform_3, window_bounds = array<i64: 8, 128>}]} {
    %c0 = arith.constant 0 : index
    %c0_0 = arith.constant 0 : index
    %0 = vector.load %arg1[%c0, %c0_0] : memref<8x128xf32, #tpu.memory_space<vmem>>, vector<8x128xf32>
    %c0_1 = arith.constant 0 : index
    %c0_2 = arith.constant 0 : index
    %c0_3 = arith.constant 0 : index
    %1 = vector.load %arg2[%c0_1, %c0_2, %c0_3] : memref<3x128x128xf32, #tpu.memory_space<vmem>>, vector<1x128x128xf32>
    %2 = vector.shape_cast %1 : vector<1x128x128xf32> to vector<128x128xf32>
    %cst = arith.constant dense<0.000000e+00> : vector<8x128xf32>
    %3 = tpu.matmul %0, %2, %cst {dimension_numbers = #tpu.dot_dimension_numbers<[1], [0], [0], [1], [0, 0, 1, 1], [], []>} : vector<8x128xf32>, vector<128x128xf32>, vector<8x128xf32> -> vector<8x128xf32>
    %c0_4 = arith.constant 0 : index
    %c0_5 = arith.constant 0 : index
    %c0_6 = arith.constant 0 : index
    %4 = vector.load %arg3[%c0_4, %c0_5, %c0_6] : memref<3x1x128xf32, #tpu.memory_space<vmem>>, vector<1x1x128xf32>
    %5 = vector.shape_cast %4 : vector<1x1x128xf32> to vector<1x128xf32>
    %6 = vector.broadcast %5 : vector<1x128xf32> to vector<8x128xf32>
    %7 = arith.addf %3, %6 : vector<8x128xf32>
    %cst_7 = arith.constant 0.000000e+00 : f32
    %8 = vector.broadcast %cst_7 : f32 to vector<8x128xf32>
    %9 = arith.maximumf %7, %8 : vector<8x128xf32>
    %c1 = arith.constant 1 : index
    %c0_8 = arith.constant 0 : index
    %c0_9 = arith.constant 0 : index
    %10 = vector.load %arg2[%c1, %c0_8, %c0_9] : memref<3x128x128xf32, #tpu.memory_space<vmem>>, vector<1x128x128xf32>
    %11 = vector.shape_cast %10 : vector<1x128x128xf32> to vector<128x128xf32>
    %cst_10 = arith.constant dense<0.000000e+00> : vector<8x128xf32>
    %12 = tpu.matmul %9, %11, %cst_10 {dimension_numbers = #tpu.dot_dimension_numbers<[1], [0], [0], [1], [0, 0, 1, 1], [], []>} : vector<8x128xf32>, vector<128x128xf32>, vector<8x128xf32> -> vector<8x128xf32>
    %c1_11 = arith.constant 1 : index
    %c0_12 = arith.constant 0 : index
    %c0_13 = arith.constant 0 : index
    %13 = vector.load %arg3[%c1_11, %c0_12, %c0_13] : memref<3x1x128xf32, #tpu.memory_space<vmem>>, vector<1x1x128xf32>
    %14 = vector.shape_cast %13 : vector<1x1x128xf32> to vector<1x128xf32>
    %15 = vector.broadcast %14 : vector<1x128xf32> to vector<8x128xf32>
    %16 = arith.addf %12, %15 : vector<8x128xf32>
    %cst_14 = arith.constant 0.000000e+00 : f32
    %17 = vector.broadcast %cst_14 : f32 to vector<8x128xf32>
    %18 = arith.maximumf %16, %17 : vector<8x128xf32>
    %c2 = arith.constant 2 : index
    %c0_15 = arith.constant 0 : index
    %c0_16 = arith.constant 0 : index
    %19 = vector.load %arg2[%c2, %c0_15, %c0_16] : memref<3x128x128xf32, #tpu.memory_space<vmem>>, vector<1x128x128xf32>
    %20 = vector.shape_cast %19 : vector<1x128x128xf32> to vector<128x128xf32>
    %cst_17 = arith.constant dense<0.000000e+00> : vector<8x128xf32>
    %21 = tpu.matmul %18, %20, %cst_17 {dimension_numbers = #tpu.dot_dimension_numbers<[1], [0], [0], [1], [0, 0, 1, 1], [], []>} : vector<8x128xf32>, vector<128x128xf32>, vector<8x128xf32> -> vector<8x128xf32>
    %c2_18 = arith.constant 2 : index
    %c0_19 = arith.constant 0 : index
    %c0_20 = arith.constant 0 : index
    %22 = vector.load %arg3[%c2_18, %c0_19, %c0_20] : memref<3x1x128xf32, #tpu.memory_space<vmem>>, vector<1x1x128xf32>
    %23 = vector.shape_cast %22 : vector<1x1x128xf32> to vector<1x128xf32>
    %24 = vector.broadcast %23 : vector<1x128xf32> to vector<8x128xf32>
    %25 = arith.addf %21, %24 : vector<8x128xf32>
    %cst_21 = arith.constant 0.000000e+00 : f32
    %26 = vector.broadcast %cst_21 : f32 to vector<8x128xf32>
    %27 = arith.maximumf %25, %26 : vector<8x128xf32>
    %c0_22 = arith.constant 0 : index
    %c0_23 = arith.constant 0 : index
    %28 = vector.load %arg4[%c0_22, %c0_23] : memref<8x128xf32, #tpu.memory_space<vmem>>, vector<8x128xf32>
    tpu.vector_store %arg4[%c0_22, %c0_23], %27 {strides = array<i32>} : memref<8x128xf32, #tpu.memory_space<vmem>>, vector<8x128xf32>,
    return
  }
  func.func @transform_0(%arg0: i32) -> (i32, i32) {
    %c0_i32 = arith.constant 0 : i32
    %c0_i32_0 = arith.constant 0 : i32
    return %arg0, %c0_i32 : i32, i32
  }
  func.func @transform_1(%arg0: i32) -> (i32, i32, i32) {
    %c0_i32 = arith.constant 0 : i32
    %c0_i32_0 = arith.constant 0 : i32
    %c0_i32_1 = arith.constant 0 : i32
    %c0_i32_2 = arith.constant 0 : i32
    return %c0_i32, %c0_i32_0, %c0_i32_1 : i32, i32, i32
  }
  func.func @transform_2(%arg0: i32) -> (i32, i32, i32) {
    %c0_i32 = arith.constant 0 : i32
    %c0_i32_0 = arith.constant 0 : i32
    %c0_i32_1 = arith.constant 0 : i32
    %c0_i32_2 = arith.constant 0 : i32
    return %c0_i32, %c0_i32_0, %c0_i32_1 : i32, i32, i32
  }
  func.func @transform_3(%arg0: i32) -> (i32, i32) {
    %c0_i32 = arith.constant 0 : i32
    %c0_i32_0 = arith.constant 0 : i32
    return %arg0, %c0_i32 : i32, i32
  }
}

</mosaic_0001>

<bundles_post_ra>
// kernel: nn_decoder_forward.1
= control target key start
LH: loop header
LB: loop body
LE: loop exit
PB: predicated region body
PF: predicated region fallthrough
CT: control target
= control target key end

     0   :  { %8 = vsyncpa [#allocation3], 0  ;;  %s641_s0 = inlined_call_operand.vmem [shape: f32[8,128], index: 0, kind: input, shape index: {}]   ;;  %s642_s1 = inlined_call_operand.hbm [shape: f32[3,128,128], index: 1, kind: input, shape index: {}]   ;;  %s643_s2 = inlined_call_operand.vmem [shape: f32[3,1,128], index: 2, kind: input, shape index: {}]   ;;  %s644_s3 = inlined_call_operand.hbm [shape: f32[8,128], index: 3, kind: output, shape index: {}]  }
   0x1   :  { %9 = vsyncpa [#allocation4], 0  ;;  %s543_s12 = smov [#allocation2]  }
   0x2   :  { %s17_s13 = sshll.u32 %s543_s12, 4  ;;  %s18_s13 = int_to_ptr.vmem [resolvable:$true] %s17_s13 }
   0x3   :  { %s507_s14 = scalar_lea.vmem %s18_s13, 6144  ;;  %p512_p1 = scmp.lt.s32.totalorder %s18_s13, %s18_s13 }
   0x4   :  { %p508_p0 = scmp.ne.s32.totalorder %s18_s13, %s507_s14  ;;  %p513_p2 = scmp.lt.s32.totalorder %s507_s14, %s507_s14 }
   0x6   :  { %p514_p3 = por %p513_p2, %p512_p1 }
   0x8   :  { %p515_p4 = pnand %p514_p3, %p508_p0 }
   0xa   :  { %518 = shalt.err (!%p515_p4)
}
   0xb   :  { %s544_s15 = smov 128   ;;  %s545_s16 = smov 8  }
   0xc   :  { %23 = dma.hbm_to_vmem [thread:$0]  %s642_s1, 6144, %s18_s13, [#allocation3], %s544_s15, %s544_s15, %s545_s16  }
   0xd   :  { %539 = dma.done.wait [#allocation3], 6144  }
   0xe   :  { %540 = vsyncadd [#allocation3], 4294961152  ;;  %v546_v0 = vmov 0.0   ;;  %vm547_vm0 = vmmov 0   ;;  %v45_v1 = vld [vmem:[#allocation2 + $0x78] sm:$0xff]  ;;  %v44_v2 = vld [vmem:[#allocation2 + $0x70] sm:$0xff] }
   0xf   :  { %388 = vmatprep.subr.mxu0 %v546_v0  ;;  %420 = vmatprep.mubr.msk.f32.mxu0 %vm547_vm0, %v546_v0  ;;  %v43_v3 = vld [vmem:[#allocation2 + $0x68] sm:$0xff]  ;;  %v42_v4 = vld [vmem:[#allocation2 + $0x60] sm:$0xff]  ;;  %v140_v5 = vld [vmem:[#allocation2 + $0xf8] sm:$0xff]  ;;  %s548_s25 = smov [#allocation5]  }
  0x10   :  { %423 = vmatprep.subr.mxu1 %v546_v0  ;;  %455 = vmatprep.mubr.msk.f32.mxu1 %vm547_vm0, %v546_v0  ;;  %v41_v6 = vld [vmem:[#allocation2 + $0x58] sm:$0xff]  ;;  %v139_v7 = vld [vmem:[#allocation2 + $0xf0] sm:$0xff]  ;;  %v138_v8 = vld [vmem:[#allocation2 + $0xe8] sm:$0xff]  ;;  %s323_s26 = sshll.u32 %s548_s25, 4  ;;  %s324_s26 = int_to_ptr.vmem [resolvable:$true] %s323_s26 }
  0x11   :  { %389 = vmatpush3.msra.mxu0 %v45_v1  ;;  %424 = vmatpush3.msra.mxu1 %v140_v5  ;;  %v40_v9 = vld [vmem:[#allocation2 + $0x50] sm:$0xff]  ;;  %v137_v10 = vld [vmem:[#allocation2 + $0xe0] sm:$0xff]  ;;  %v39_v11 = vld [vmem:[#allocation2 + $0x48] sm:$0xff]  ;;  %s519_s27 = scalar_lea.vmem %s324_s26, 128  ;;  %p524_p6 = scmp.lt.s32.totalorder %s324_s26, %s324_s26 }
  0x12   :  { %390 = vmatprep.subr.mxu0 %v546_v0  ;;  %425 = vmatprep.subr.mxu1 %v546_v0  ;;  %v136_v12 = vld [vmem:[#allocation2 + $0xd8] sm:$0xff]  ;;  %v38_v13 = vld [vmem:[#allocation2 + $0x40] sm:$0xff]  ;;  %v135_v14 = vld [vmem:[#allocation2 + $0xd0] sm:$0xff]  ;;  %p520_p5 = scmp.ne.s32.totalorder %s324_s26, %s519_s27  ;;  %p525_p7 = scmp.lt.s32.totalorder %s519_s27, %s519_s27 }
  0x13   :  { %391 = vmatpush3.msra.mxu0 %v44_v2  ;;  %426 = vmatpush3.msra.mxu1 %v139_v7  ;;  %v37_v15 = vld [vmem:[#allocation2 + $0x38] sm:$0xff]  ;;  %v134_v16 = vld [vmem:[#allocation2 + $0xc8] sm:$0xff]  ;;  %v36_v17 = vld [vmem:[#allocation2 + $0x30] sm:$0xff] }
  0x14   :  { %392 = vmatprep.subr.mxu0 %v546_v0  ;;  %427 = vmatprep.subr.mxu1 %v546_v0  ;;  %v133_v18 = vld [vmem:[#allocation2 + $0xc0] sm:$0xff]  ;;  %v35_v19 = vld [vmem:[#allocation2 + $0x28] sm:$0xff]  ;;  %v132_v20 = vld [vmem:[#allocation2 + $0xb8] sm:$0xff]  ;;  %p526_p8 = por %p525_p7, %p524_p6 }
  0x15   :  { %393 = vmatpush3.msra.mxu0 %v43_v3  ;;  %428 = vmatpush3.msra.mxu1 %v138_v8  ;;  %v34_v21 = vld [vmem:[#allocation2 + $0x20] sm:$0xff]  ;;  %v131_v22 = vld [vmem:[#allocation2 + $0xb0] sm:$0xff]  ;;  %v33_v23 = vld [vmem:[#allocation2 + $0x18] sm:$0xff] }
  0x16   :  { %394 = vmatprep.subr.mxu0 %v546_v0  ;;  %429 = vmatprep.subr.mxu1 %v546_v0  ;;  %v130_v24 = vld [vmem:[#allocation2 + $0xa8] sm:$0xff]  ;;  %v32_v25 = vld [vmem:[#allocation2 + $0x10] sm:$0xff]  ;;  %v129_v26 = vld [vmem:[#allocation2 + $0xa0] sm:$0xff]  ;;  %p527_p9 = pnand %p526_p8, %p520_p5 }
  0x17   :  { %395 = vmatpush3.msra.mxu0 %v42_v4  ;;  %430 = vmatpush3.msra.mxu1 %v137_v10  ;;  %v31_v27 = vld [vmem:[#allocation2 + $0x8] sm:$0xff]  ;;  %v128_v28 = vld [vmem:[#allocation2 + $0x98] sm:$0xff]  ;;  %v30_v29 = vld [vmem:[#allocation2] sm:$0xff] }
  0x18   :  { %396 = vmatprep.subr.mxu0 %v546_v0  ;;  %431 = vmatprep.subr.mxu1 %v546_v0  ;;  %v29_v30 = vld [vmem:[%s641_s0] sm:$0xff]  ;;  %v127_v31 = vld [vmem:[#allocation2 + $0x90] sm:$0xff]  ;;  %v126_v32 = vld [vmem:[#allocation2 + $0x88] sm:$0xff] }
  0x19   :  { %397 = vmatpush3.msra.mxu0 %v41_v6  ;;  %432 = vmatpush3.msra.mxu1 %v136_v12  ;;  %v125_v33 = vld [vmem:[#allocation2 + $0x80] sm:$0xff]  ;;  %v236_v34 = vld [vmem:[#allocation2 + $0x178] sm:$0xff]  ;;  %v235_v35 = vld [vmem:[#allocation2 + $0x170] sm:$0xff] }
  0x1a   :  { %398 = vmatprep.subr.mxu0 %v546_v0  ;;  %433 = vmatprep.subr.mxu1 %v546_v0  ;;  %v234_v36 = vld [vmem:[#allocation2 + $0x168] sm:$0xff]  ;;  %v233_v37 = vld [vmem:[#allocation2 + $0x160] sm:$0xff]  ;;  %v232_v38 = vld [vmem:[#allocation2 + $0x158] sm:$0xff] }
  0x1b   :  { %399 = vmatpush3.msra.mxu0 %v40_v9  ;;  %434 = vmatpush3.msra.mxu1 %v135_v14  ;;  %v231_v39 = vld [vmem:[#allocation2 + $0x150] sm:$0xff]  ;;  %v230_v40 = vld [vmem:[#allocation2 + $0x148] sm:$0xff]  ;;  %v229_v41 = vld [vmem:[#allocation2 + $0x140] sm:$0xff] }
  0x1c   :  { %400 = vmatprep.subr.mxu0 %v546_v0  ;;  %435 = vmatprep.subr.mxu1 %v546_v0  ;;  %v228_v42 = vld [vmem:[#allocation2 + $0x138] sm:$0xff]  ;;  %v227_v43 = vld [vmem:[#allocation2 + $0x130] sm:$0xff]  ;;  %v226_v44 = vld [vmem:[#allocation2 + $0x128] sm:$0xff] }
  0x1d   :  { %401 = vmatpush3.msra.mxu0 %v39_v11  ;;  %436 = vmatpush3.msra.mxu1 %v134_v16  ;;  %v225_v45 = vld [vmem:[#allocation2 + $0x120] sm:$0xff]  ;;  %v224_v46 = vld [vmem:[#allocation2 + $0x118] sm:$0xff]  ;;  %v223_v52 = vld [vmem:[#allocation2 + $0x110] sm:$0xff] }
  0x1e   :  { %402 = vmatprep.subr.mxu0 %v546_v0  ;;  %437 = vmatprep.subr.mxu1 %v546_v0  ;;  %v332_v47 = vld [vmem:[%s643_s2] ss:$0 sm:$0xff]  ;;  %v222_v53 = vld [vmem:[#allocation2 + $0x108] sm:$0xff]  ;;  %v334_v55 = vld [vmem:[%s643_s2 + $0x1] ss:$0 sm:$0xff] }
  0x1f   :  { %403 = vmatpush3.msra.mxu0 %v38_v13  ;;  %438 = vmatpush3.msra.mxu1 %v133_v18  ;;  %v221_v54 = vld [vmem:[#allocation2 + $0x100] sm:$0xff] }
  0x20   :  { %404 = vmatprep.subr.mxu0 %v546_v0  ;;  %439 = vmatprep.subr.mxu1 %v546_v0  ;;  %v336_v60 = vld [vmem:[%s643_s2 + $0x2] ss:$0 sm:$0xff] }
  0x21   :  { %405 = vmatpush3.msra.mxu0 %v37_v15  ;;  %440 = vmatpush3.msra.mxu1 %v132_v20 }
  0x22   :  { %406 = vmatprep.subr.mxu0 %v546_v0  ;;  %441 = vmatprep.subr.mxu1 %v546_v0 }
  0x23   :  { %407 = vmatpush3.msra.mxu0 %v36_v17  ;;  %442 = vmatpush3.msra.mxu1 %v131_v22 }
  0x24   :  { %408 = vmatprep.subr.mxu0 %v546_v0  ;;  %443 = vmatprep.subr.mxu1 %v546_v0 }
  0x25   :  { %409 = vmatpush3.msra.mxu0 %v35_v19  ;;  %444 = vmatpush3.msra.mxu1 %v130_v24 }
  0x26   :  { %410 = vmatprep.subr.mxu0 %v546_v0  ;;  %445 = vmatprep.subr.mxu1 %v546_v0 }
  0x27   :  { %411 = vmatpush3.msra.mxu0 %v34_v21  ;;  %446 = vmatpush3.msra.mxu1 %v129_v26 }
  0x28   :  { %412 = vmatprep.subr.mxu0 %v546_v0  ;;  %447 = vmatprep.subr.mxu1 %v546_v0 }
  0x29   :  { %413 = vmatpush3.msra.mxu0 %v33_v23  ;;  %448 = vmatpush3.msra.mxu1 %v128_v28 }
  0x2a   :  { %414 = vmatprep.subr.mxu0 %v546_v0  ;;  %449 = vmatprep.subr.mxu1 %v546_v0 }
  0x2b   :  { %415 = vmatpush3.msra.mxu0 %v32_v25  ;;  %450 = vmatpush3.msra.mxu1 %v127_v31 }
  0x2c   :  { %416 = vmatprep.subr.mxu0 %v546_v0  ;;  %451 = vmatprep.subr.mxu1 %v546_v0 }
  0x2d   :  { %417 = vmatpush3.msra.mxu0 %v31_v27  ;;  %452 = vmatpush3.msra.mxu1 %v126_v32 }
  0x2e   :  { %418 = vmatprep.subr.mxu0 %v546_v0  ;;  %453 = vmatprep.subr.mxu1 %v546_v0 }
  0x2f   :  { %419 = vmatpush3.msra.mxu0 %v30_v29  ;;  %454 = vmatpush3.msra.mxu1 %v125_v33 }
  0x30   :  { %421 = vmatmul.mubr.f32.vlgmr.msra.gmra.mxu0 %v29_v30  ;;  %458 = vmatprep.subr.mxu0 %v546_v0 }
  0x31   :  { %490 = vmatprep.mubr.msk.f32.mxu0 %vm547_vm0, %v546_v0  ;;  %459 = vmatpush3.msra.mxu0 %v236_v34 }
  0x32   :  { %460 = vmatprep.subr.mxu0 %v546_v0 }
  0x33   :  { %461 = vmatpush3.msra.mxu0 %v235_v35 }
  0x34   :  { %462 = vmatprep.subr.mxu0 %v546_v0 }
  0x35   :  { %463 = vmatpush3.msra.mxu0 %v234_v36 }
  0x36   :  { %464 = vmatprep.subr.mxu0 %v546_v0 }
  0x37   :  { %465 = vmatpush3.msra.mxu0 %v233_v37 }
  0x38   :  { %466 = vmatprep.subr.mxu0 %v546_v0 }
  0x39   :  { %467 = vmatpush3.msra.mxu0 %v232_v38 }
  0x3a   :  { %468 = vmatprep.subr.mxu0 %v546_v0 }
  0x3b   :  { %469 = vmatpush3.msra.mxu0 %v231_v39 }
  0x3c   :  { %470 = vmatprep.subr.mxu0 %v546_v0 }
  0x3d   :  { %471 = vmatpush3.msra.mxu0 %v230_v40 }
  0x3e   :  { %472 = vmatprep.subr.mxu0 %v546_v0 }
  0x3f   :  { %473 = vmatpush3.msra.mxu0 %v229_v41 }
  0x40   :  { %474 = vmatprep.subr.mxu0 %v546_v0 }
  0x41   :  { %475 = vmatpush3.msra.mxu0 %v228_v42 }
  0x42   :  { %476 = vmatprep.subr.mxu0 %v546_v0 }
  0x43   :  { %477 = vmatpush3.msra.mxu0 %v227_v43 }
  0x44   :  { %478 = vmatprep.subr.mxu0 %v546_v0 }
  0x45   :  { %479 = vmatpush3.msra.mxu0 %v226_v44 }
  0x46   :  { %480 = vmatprep.subr.mxu0 %v546_v0 }
  0x47   :  { %481 = vmatpush3.msra.mxu0 %v225_v45 }
  0x48   :  { %482 = vmatprep.subr.mxu0 %v546_v0 }
  0x49   :  { %483 = vmatpush3.msra.mxu0 %v224_v46 }
  0x4a   :  { %484 = vmatprep.subr.mxu0 %v546_v0 }
  0x4b   :  { %485 = vmatpush3.msra.mxu0 %v223_v52 }
  0x4c   :  { %486 = vmatprep.subr.mxu0 %v546_v0 }
  0x4d   :  { %487 = vmatpush3.msra.mxu0 %v222_v53 }
  0x4e   :  { %488 = vmatprep.subr.mxu0 %v546_v0 }
  0x4f   :  { %489 = vmatpush3.msra.mxu0 %v221_v54 }
  0xf0   :  { %v119_v48 = vpop.f32.mrf.mxu0 }
  0xf1   :  { %v120_v49 = vadd.f32 %v332_v47, %v119_v48 }
  0xf2   :  { %v422_v50 = vpop.f32.mrf.mxu0 }
  0xf3   :  { %v123_v51 = vmax.f32 %v120_v49, 0.0 }
  0xf5   :  { %456 = vmatmul.mubr.f32.vlgmr.msra.gmra.mxu1 %v123_v51 }
 0x1b5   :  { %v215_v56 = vpop.f32.mrf.mxu1 }
 0x1b6   :  { %v216_v57 = vadd.f32 %v334_v55, %v215_v56 }
 0x1b7   :  { %v457_v58 = vpop.f32.mrf.mxu1 }
 0x1b8   :  { %v219_v59 = vmax.f32 %v216_v57, 0.0 }
 0x1ba   :  { %491 = vmatmul.mubr.f32.vlgmr.msra.gmra.mxu0 %v219_v59 }
 0x27a   :  { %v311_v61 = vpop.f32.mrf.mxu0 }
 0x27b   :  { %v312_v62 = vadd.f32 %v336_v60, %v311_v61 }
 0x27c   :  { %v492_v63 = vpop.f32.mrf.mxu0 }
 0x27d   :  { %v315_v0 = vmax.f32 %v312_v62, 0.0 }
 0x27f   :  { %316 = vst [vmem:[#allocation5] sm:$0xff] %v315_v0 }
 0x280   :  { %530 = shalt.err (!%p527_p9)
}
 0x281   :  { %326 = dma.vmem_to_hbm [thread:$0]  %s324_s26, 128, %s644_s3, [#allocation4]  }
 0x282   :  { %541 = dma.done.wait [#allocation4], 128  }
 0x283   :  { %542 = vsyncadd [#allocation4], 4294967168 }
 0x284   :  { %330 = vsyncpa [#allocation3], 1 }
 0x285   :  { %331 = vsyncpa [#allocation4], 1 }

</bundles_post_ra>
